<compile_context>
chip_gen: v7x
topology: tpu7x:2x2x1
jax: 0.10.0
libtpu: 0.0.40
codegen_flags: <defaults>
</compile_context>

<pallas_src>
import jax
import jax.numpy as jnp
from jax import lax
from jax.experimental import pallas as pl
from jax.experimental.pallas import tpu as pltpu

EPS = 1e-5


def bn_relu_kernel(x_ref, gamma_ref, beta_ref, o_ref):
    # x_ref:     (M, C)  -- M = N*H*W samples on sublanes, C channels on lanes
    # gamma_ref: (1, C)
    # beta_ref:  (1, C)
    x = x_ref[...].astype(jnp.float32)
    m = x.shape[0]
    inv_m = jnp.float32(1.0 / m)              # true sample count divisor

    # single-pass batch statistics (biased variance, matches PyTorch training)
    s = jnp.sum(x, axis=0, keepdims=True)         # (1, C)  VPU adds over sublanes
    sq = jnp.sum(x * x, axis=0, keepdims=True)    # (1, C)
    mean = s * inv_m
    var = sq * inv_m - mean * mean
    inv_std = lax.rsqrt(var + EPS)

    # fold affine into a single FMA: y = x * scale + bias
    scale = gamma_ref[...] * inv_std              # (1, C)
    bias = beta_ref[...] - mean * scale           # (1, C)
    y = x * scale + bias
    o_ref[...] = jnp.maximum(y, 0.0).astype(o_ref.dtype)


def batchnorm_relu(x_nchw, gamma, beta):
    """x_nchw: (N, C, H, W) f32; gamma, beta: (C,) f32."""
    N, C, H, W = x_nchw.shape
    M = N * H * W

    # NCHW -> (N*H*W, C): channels land on the lane axis.  The slab is tiny
    # (~220 KB), so the layout change is a negligible XLA transpose; for large
    # N this wrapper (and the single-block kernel) would need a tiled,
    # accumulator-over-grid redesign.
    x2d = jnp.transpose(x_nchw, (0, 2, 3, 1)).reshape(M, C)
    g2d = gamma.reshape(1, C)
    b2d = beta.reshape(1, C)

    out2d = pl.pallas_call(
        bn_relu_kernel,
        out_shape=jax.ShapeDtypeStruct((M, C), x_nchw.dtype),
        # no grid: single whole-array VMEM block (no loop bookkeeping or
        # double-buffer allocation for a one-shot 220 KB problem)
        in_specs=[
            pl.BlockSpec(memory_space=pltpu.MemorySpace.VMEM),
            pl.BlockSpec(memory_space=pltpu.MemorySpace.VMEM),
            pl.BlockSpec(memory_space=pltpu.MemorySpace.VMEM),
        ],
        out_specs=pl.BlockSpec(memory_space=pltpu.MemorySpace.VMEM),
    )(x2d, g2d, b2d)

    # (N*H*W, C) -> NCHW
    return jnp.transpose(out2d.reshape(N, H, W, C), (0, 3, 1, 2))


if __name__ == "__main__":
    key = jax.random.PRNGKey(0)
    kx, kg, kb = jax.random.split(key, 3)

    # shapes implied by the module: BatchNorm2d(1120) on [1, 1120, 7, 7]
    N, C, H, W = 1, 1120, 7, 7
    x = jax.random.normal(kx, (N, C, H, W), dtype=jnp.float32)

    # nontrivial affine parameters to exercise the gamma/beta path
    gamma = 1.0 + 0.05 * jax.random.normal(kg, (C,), dtype=jnp.float32)
    beta = 0.05 * jax.random.normal(kb, (C,), dtype=jnp.float32)

    out = batchnorm_relu(x, gamma, beta)
    jax.block_until_ready(out)

    # pure-JAX reference of training-mode BN (biased batch stats) + ReLU
    mean = jnp.mean(x, axis=(0, 2, 3), keepdims=True)
    var = jnp.mean((x - mean) ** 2, axis=(0, 2, 3), keepdims=True)
    ref = (x - mean) * lax.rsqrt(var + EPS)
    ref = ref * gamma.reshape(1, C, 1, 1) + beta.reshape(1, C, 1, 1)
    ref = jnp.maximum(ref, 0.0)

    assert out.shape == (N, C, H, W)
    assert jnp.max(jnp.abs(out - ref)) < 1e-4

    print("KERNEL_OK")
</pallas_src>

<mosaic_0001>
module attributes {stable_mosaic.version = 11 : i64} {
  func.func @bn_relu_kernel(%arg0: memref<49x1120xf32, #tpu.memory_space<vmem>>, %arg1: memref<1x1120xf32, #tpu.memory_space<vmem>>, %arg2: memref<1x1120xf32, #tpu.memory_space<vmem>>, %arg3: memref<49x1120xf32, #tpu.memory_space<vmem>>) attributes {dimension_semantics = [], scalar_prefetch = 0 : i64, scratch_operands = 0 : i64, tpu.core_type = #tpu.core_type<tc>} {
    %c0 = arith.constant 0 : index
    %c0_0 = arith.constant 0 : index
    %0 = vector.load %arg0[%c0, %c0_0] : memref<49x1120xf32, #tpu.memory_space<vmem>>, vector<49x1120xf32>
    %cst = arith.constant dense<0.000000e+00> : vector<1120xf32>
    %1 = vector.multi_reduction <add>, %0, %cst [0] : vector<49x1120xf32> to vector<1120xf32>
    %2 = vector.shape_cast %1 : vector<1120xf32> to vector<1x1120xf32>
    %3 = arith.mulf %0, %0 : vector<49x1120xf32>
    %cst_1 = arith.constant dense<0.000000e+00> : vector<1120xf32>
    %4 = vector.multi_reduction <add>, %3, %cst_1 [0] : vector<49x1120xf32> to vector<1120xf32>
    %5 = vector.shape_cast %4 : vector<1120xf32> to vector<1x1120xf32>
    %cst_2 = arith.constant 0.0204081628 : f32
    %6 = vector.broadcast %cst_2 : f32 to vector<1x1120xf32>
    %7 = arith.mulf %2, %6 : vector<1x1120xf32>
    %cst_3 = arith.constant 0.0204081628 : f32
    %8 = vector.broadcast %cst_3 : f32 to vector<1x1120xf32>
    %9 = arith.mulf %5, %8 : vector<1x1120xf32>
    %10 = arith.mulf %7, %7 : vector<1x1120xf32>
    %11 = arith.subf %9, %10 : vector<1x1120xf32>
    %cst_4 = arith.constant 9.99999974E-6 : f32
    %12 = vector.broadcast %cst_4 : f32 to vector<1x1120xf32>
    %13 = arith.addf %11, %12 : vector<1x1120xf32>
    %14 = math.rsqrt %13 : vector<1x1120xf32>
    %c0_5 = arith.constant 0 : index
    %c0_6 = arith.constant 0 : index
    %15 = vector.load %arg1[%c0_5, %c0_6] : memref<1x1120xf32, #tpu.memory_space<vmem>>, vector<1x1120xf32>
    %16 = arith.mulf %15, %14 : vector<1x1120xf32>
    %c0_7 = arith.constant 0 : index
    %c0_8 = arith.constant 0 : index
    %17 = vector.load %arg2[%c0_7, %c0_8] : memref<1x1120xf32, #tpu.memory_space<vmem>>, vector<1x1120xf32>
    %18 = arith.mulf %7, %16 : vector<1x1120xf32>
    %19 = arith.subf %17, %18 : vector<1x1120xf32>
    %20 = vector.broadcast %16 : vector<1x1120xf32> to vector<49x1120xf32>
    %21 = arith.mulf %0, %20 : vector<49x1120xf32>
    %22 = vector.broadcast %19 : vector<1x1120xf32> to vector<49x1120xf32>
    %23 = arith.addf %21, %22 : vector<49x1120xf32>
    %cst_9 = arith.constant 0.000000e+00 : f32
    %24 = vector.broadcast %cst_9 : f32 to vector<49x1120xf32>
    %25 = arith.maximumf %23, %24 : vector<49x1120xf32>
    %c0_10 = arith.constant 0 : index
    %c0_11 = arith.constant 0 : index
    %26 = vector.load %arg3[%c0_10, %c0_11] : memref<49x1120xf32, #tpu.memory_space<vmem>>, vector<49x1120xf32>
    tpu.vector_store %arg3[%c0_10, %c0_11], %25 {strides = array<i32>} : memref<49x1120xf32, #tpu.memory_space<vmem>>, vector<49x1120xf32>,
    return
  }
}

</mosaic_0001>

<bundles_post_ra>
// kernel: tpu_custom_call.1
= control target key start
LH: loop header
LB: loop body
LE: loop exit
PB: predicated region body
PF: predicated region fallthrough
CT: control target
= control target key end

     0   :  { %8 = vsyncpa [#allocation3], 0  ;;  %s2113_s0 = inlined_call_operand.hbm [shape: f32[49,1120], index: 0, kind: input, shape index: {}]   ;;  %s2114_s1 = inlined_call_operand.hbm [shape: f32[1,1120], index: 1, kind: input, shape index: {}]   ;;  %s2115_s2 = inlined_call_operand.hbm [shape: f32[1,1120], index: 2, kind: input, shape index: {}]   ;;  %s2116_s3 = inlined_call_operand.hbm [shape: f32[49,1120], index: 3, kind: output, shape index: {}]  }
   0x1   :  { %9 = vsyncpa [#allocation6], 0 }
   0x2   :  { %10 = vsyncpa [#allocation4], 0  ;;  %s1151_s12 = smov [#allocation5]   ;;  %s1152_s14 = smov [#allocation2]  }
   0x3   :  { %s29_s13 = sshll.u32 %s1151_s12, 4  ;;  %s16_s15 = sshll.u32 %s1152_s14, 4  ;;  %s30_s13 = int_to_ptr.vmem [resolvable:$true] %s29_s13  ;;  %s1178_s15 = int_to_ptr.vmem [resolvable:$true] %s16_s15 }
   0x4   :  { %s1057_s18 = scalar_lea.hbm %s2114_s1, 144 }
   0x5   :  { %p1058_p0 = scmp.ne.s32.totalorder %s2114_s1, %s1057_s18  ;;  %p1061_p1 = scmp.lt.u32.totalorder %s1057_s18, %s2114_s1 }
   0x7   :  { %p1063_p2 = pnand %p1061_p1, %p1058_p0 }
   0x9   :  { %1066 = shalt.err (!%p1063_p2)
}
   0xa   :  { %s1067_s23 = scalar_lea.vmem %s30_s13, 144  ;;  %s1071_s24 = scalar_lea.vmem %s30_s13, 160 }
   0xb   :  { %p1068_p3 = scmp.ne.s32.totalorder %s30_s13, %s1067_s23  ;;  %p1072_p4 = scmp.lt.s32.totalorder %s30_s13, %s30_s13 }
   0xc   :  { %p1073_p5 = scmp.lt.s32.totalorder %s1071_s24, %s1067_s23 }
   0xe   :  { %p1074_p6 = por %p1073_p5, %p1072_p4 }
  0x10   :  { %p1075_p7 = pnand %p1074_p6, %p1068_p3 }
  0x12   :  { %1078 = shalt.err (!%p1075_p7)
}
  0x13   :  { %32 = dma.hbm_to_vmem [thread:$0]  %s2114_s1, 144, %s30_s13, [#allocation6]  }
  0x14   :  { %s1079_s29 = scalar_lea.hbm %s2113_s0, 8064 }
  0x15   :  { %p1080_p8 = scmp.ne.s32.totalorder %s2113_s0, %s1079_s29  ;;  %p1083_p9 = scmp.lt.u32.totalorder %s1079_s29, %s2113_s0 }
  0x17   :  { %p1085_p10 = pnand %p1083_p9, %p1080_p8 }
  0x19   :  { %1088 = shalt.err (!%p1085_p10)
}
  0x1a   :  { %s1089_s7 = scalar_lea.vmem %s1178_s15, 8064  ;;  %p1094_p12 = scmp.lt.s32.totalorder %s1178_s15, %s1178_s15 }
  0x1b   :  { %p1090_p11 = scmp.ne.s32.totalorder %s1178_s15, %s1089_s7  ;;  %p1095_p13 = scmp.lt.s32.totalorder %s1089_s7, %s1089_s7 }
  0x1d   :  { %p1096_p0 = por %p1095_p13, %p1094_p12 }
  0x1f   :  { %p1097_p1 = pnand %p1096_p0, %p1090_p11 }
  0x21   :  { %1100 = shalt.err (!%p1097_p1)
}
  0x22   :  { %s1153_s1 = smov 1152   ;;  %s1154_s8 = smov 72  }
  0x23   :  { %22 = dma.hbm_to_vmem [thread:$0]  %s2113_s0, 8064, %s1178_s15, [#allocation3], %s1153_s1, %s1153_s1, %s1154_s8  }
  0x24   :  { %s1155_s11 = smov [#allocation7]   ;;  %s1101_s16 = scalar_lea.hbm %s2115_s2, 144 }
  0x25   :  { %s39_s12 = sshll.u32 %s1155_s11, 4  ;;  %p1102_p2 = scmp.ne.s32.totalorder %s2115_s2, %s1101_s16  ;;  %s40_s12 = int_to_ptr.vmem [resolvable:$true] %s39_s12 }
  0x26   :  { %p1105_p3 = scmp.lt.u32.totalorder %s1101_s16, %s2115_s2 }
  0x28   :  { %p1107_p4 = pnand %p1105_p3, %p1102_p2 }
  0x2a   :  { %1110 = shalt.err (!%p1107_p4)
}
  0x2b   :  { %s1111_s21 = scalar_lea.vmem %s40_s12, 144  ;;  %s1115_s0 = scalar_lea.vmem %s40_s12, 160 }
  0x2c   :  { %p1112_p5 = scmp.ne.s32.totalorder %s40_s12, %s1111_s21  ;;  %p1116_p6 = scmp.lt.s32.totalorder %s40_s12, %s40_s12 }
  0x2d   :  { %p1117_p7 = scmp.lt.s32.totalorder %s1115_s0, %s1111_s21 }
  0x2f   :  { %p1118_p8 = por %p1117_p7, %p1116_p6 }
  0x31   :  { %p1119_p9 = pnand %p1118_p8, %p1112_p5 }
  0x33   :  { %1122 = shalt.err (!%p1119_p9)
}
  0x34   :  { %42 = dma.hbm_to_vmem [thread:$0]  %s2115_s2, 144, %s40_s12, [#allocation6]  }
  0x35   :  { %1145 = dma.done.wait [#allocation3], 8064  }
  0x36   :  { %1146 = vsyncadd [#allocation3], 4294959232 }
  0x37   :  { %1147 = dma.done.wait [#allocation6], 288  }
  0x38   :  { %1148 = vsyncadd [#allocation6], 4294967008  ;;  %v1224_v0 = vld [vmem:[#allocation2] sm:$0xff]  ;;  %v1226_v1 = vld [vmem:[#allocation2 + $0x8] sm:$0xff]  ;;  %vm120_vm0 = vcmask 1040384   ;;  %vm220_vm1 = vcmask 785408  }
  0x39   :  { %2170 = vst [vmem:[#allocation12_spill] sm:$0xff] %v1224_v0  ;;  %2171 = vst [vmem:[#allocation13_spill] sm:$0xff] %v1226_v1  ;;  %v1228_v2 = vld [vmem:[#allocation2 + $0x10] sm:$0xff]  ;;  %v1230_v3 = vld [vmem:[#allocation2 + $0x18] sm:$0xff]  ;;  %v1238_v6 = vmul.f32 %v1224_v0, %v1224_v0  ;;  %v1242_v7 = vmul.f32 %v1226_v1, %v1226_v1  ;;  %vm232_vm2 = vcmask 778240   ;;  %s1157_s2 = smov [#allocation8]  }
  0x3a   :  { %2172 = vst [vmem:[#allocation14_spill] sm:$0xff] %v1228_v2  ;;  %2173 = vst [vmem:[#allocation15_spill] sm:$0xff] %v1230_v3  ;;  %v1232_v4 = vld [vmem:[#allocation2 + $0x20] sm:$0xff]  ;;  %v1234_v5 = vld [vmem:[#allocation2 + $0x28] sm:$0xff]  ;;  %v1252_v12 = vmul.f32 %v1228_v2, %v1228_v2  ;;  %v1256_v13 = vmul.f32 %v1230_v3, %v1230_v3  ;;  %s997_s23 = sshll.u32 %s1157_s2, 4  ;;  %s998_s23 = int_to_ptr.vmem [resolvable:$true] %s997_s23 }
  0x3b   :  { %2174 = vst [vmem:[#allocation16_spill] sm:$0xff] %v1232_v4  ;;  %2175 = vst [vmem:[#allocation17_spill] sm:$0xff] %v1234_v5  ;;  %v1244_v9 = vld [vmem:[#allocation2 + $0x30] sm:$0xff]  ;;  %v1246_v10 = vld [vmem:[#allocation2 + $0x38] sm:$0xff]  ;;  %v1260_v14 = vmul.f32 %v1232_v4, %v1232_v4  ;;  %v1264_v15 = vmul.f32 %v1234_v5, %v1234_v5  ;;  %s1123_s24 = scalar_lea.vmem %s998_s23, 8064  ;;  %p1128_p11 = scmp.lt.s32.totalorder %s998_s23, %s998_s23 }
  0x3c   :  { %2176 = vst [vmem:[#allocation18_spill] sm:$0xff] %v1242_v7  ;;  %2177 = vst [vmem:[#allocation19_spill] sm:$0xff] %v1244_v9  ;;  %v1248_v11 = vld [vmem:[#allocation2 + $0x48] sm:$0xff]  ;;  %v1266_v16 = vld [vmem:[#allocation2 + $0x50] sm:$0xff]  ;;  %v1276_v20 = vmul.f32 %v1244_v9, %v1244_v9  ;;  %v1280_v21 = vmul.f32 %v1246_v10, %v1246_v10  ;;  %p1124_p10 = scmp.ne.s32.totalorder %s998_s23, %s1123_s24  ;;  %p1129_p12 = scmp.lt.s32.totalorder %s1123_s24, %s1123_s24 }
  0x3d   :  { %2178 = vst [vmem:[#allocation20_spill] sm:$0xff] %v1246_v10  ;;  %2179 = vst [vmem:[#allocation21_spill] sm:$0xff] %v1248_v11  ;;  %v1268_v17 = vld [vmem:[#allocation2 + $0x58] sm:$0xff]  ;;  %v1270_v18 = vld [vmem:[#allocation2 + $0x60] sm:$0xff]  ;;  %v115_v19 = vadd.f32 %v1248_v11, %v1224_v0  ;;  %v1284_v22 = vmul.f32 %v1248_v11, %v1248_v11  ;;  %v129_v26 = vadd.f32 %v1266_v16, %v1226_v1 }
  0x3e   :  { %2180 = vst [vmem:[#allocation22_spill] sm:$0xff] %v1252_v12  ;;  %2181 = vst [vmem:[#allocation23_spill] sm:$0xff] %v1256_v13  ;;  %v1286_v23 = vld [vmem:[#allocation2 + $0x68] sm:$0xff]  ;;  %v1288_v24 = vld [vmem:[#allocation2 + $0x70] sm:$0xff]  ;;  %v142_v27 = vadd.f32 %v1268_v17, %v1228_v2  ;;  %v155_v28 = vadd.f32 %v1270_v18, %v1230_v3  ;;  %v1300_v29 = vmul.f32 %v1266_v16, %v1266_v16  ;;  %p1130_p13 = por %p1129_p12, %p1128_p11 }
  0x3f   :  { %2182 = vst [vmem:[#allocation24_spill] sm:$0xff] %v1260_v14  ;;  %2183 = vst [vmem:[#allocation25_spill] sm:$0xff] %v1264_v15  ;;  %v1290_v25 = vld [vmem:[#allocation2 + $0x78] sm:$0xff]  ;;  %v1302_v30 = vld [vmem:[#allocation2 + $0x80] sm:$0xff]  ;;  %v168_v33 = vadd.f32 %v1286_v23, %v1232_v4  ;;  %v181_v34 = vadd.f32 %v1288_v24, %v1234_v5  ;;  %v1316_v36 = vmul.f32 %v1268_v17, %v1268_v17 }
  0x40   :  { %2184 = vst [vmem:[#allocation26_spill] sm:$0xff] %v1266_v16  ;;  %2185 = vst [vmem:[#allocation27_spill] sm:$0xff] %v1268_v17  ;;  %v1304_v31 = vld [vmem:[#allocation2 + $0x90] sm:$0xff]  ;;  %v1306_v32 = vld [vmem:[#allocation2 + $0x98] sm:$0xff]  ;;  %v194_v35 = vadd.f32 %v1290_v25, %v1244_v9  ;;  %v207_v42 = vadd.f32 %v1302_v30, %v1246_v10  ;;  %v1330_v43 = vmul.f32 %v1270_v18, %v1270_v18  ;;  %p1131_p0 = pnand %p1130_p13, %p1124_p10 }
  0x41   :  { %2186 = vst [vmem:[#allocation28_spill] sm:$0xff] %v1270_v18  ;;  %2187 = vst [vmem:[#allocation29_spill] sm:$0xff] %v1276_v20  ;;  %v1318_v37 = vld [vmem:[#allocation2 + $0xa0] sm:$0xff]  ;;  %v1320_v38 = vld [vmem:[#allocation2 + $0xa8] sm:$0xff]  ;;  %v116_v40 = vadd.f32 %v115_v19, %v1304_v31  ;;  %v130_v41 = vadd.f32 %v129_v26, %v1306_v32  ;;  %v1343_v50 = vmul.f32 %v1286_v23, %v1286_v23 }
  0x42   :  { %2188 = vst [vmem:[#allocation30_spill] sm:$0xff] %v1280_v21  ;;  %2189 = vst [vmem:[#allocation31_spill] sm:$0xff] %v1286_v23  ;;  %v1322_v39 = vld [vmem:[#allocation2 + $0xb0] sm:$0xff]  ;;  %v1332_v44 = vld [vmem:[#allocation2 + $0xb8] sm:$0xff]  ;;  %v143_v47 = vadd.f32 %v142_v27, %v1318_v37  ;;  %v156_v48 = vadd.f32 %v155_v28, %v1320_v38  ;;  %v1356_v57 = vmul.f32 %v1288_v24, %v1288_v24 }
  0x43   :  { %2190 = vst [vmem:[#allocation32_spill] sm:$0xff] %v1288_v24  ;;  %2191 = vst [vmem:[#allocation33_spill] sm:$0xff] %v1290_v25  ;;  %v1334_v45 = vld [vmem:[#allocation2 + $0xc0] sm:$0xff]  ;;  %v1336_v46 = vld [vmem:[#allocation2 + $0xc8] sm:$0xff]  ;;  %v169_v49 = vadd.f32 %v168_v33, %v1322_v39  ;;  %v182_v54 = vadd.f32 %v181_v34, %v1332_v44  ;;  %v1369_v19 = vmul.f32 %v1290_v25, %v1290_v25 }
  0x44   :  { %2192 = vst [vmem:[#allocation34_spill] sm:$0xff] %v1300_v29  ;;  %2193 = vst [vmem:[#allocation35_spill] sm:$0xff] %v1302_v30  ;;  %v1345_v51 = vld [vmem:[#allocation2 + $0xd8] sm:$0xff]  ;;  %v1347_v52 = vld [vmem:[#allocation2 + $0xe0] sm:$0xff]  ;;  %v195_v55 = vadd.f32 %v194_v35, %v1334_v45  ;;  %v208_v56 = vadd.f32 %v207_v42, %v1336_v46 }
  0x45   :  { %2194 = vst [vmem:[#allocation36_spill] sm:$0xff] %v1304_v31  ;;  %2195 = vst [vmem:[#allocation37_spill] sm:$0xff] %v1306_v32  ;;  %v1349_v53 = vld [vmem:[#allocation2 + $0xe8] sm:$0xff]  ;;  %v1358_v58 = vld [vmem:[#allocation2 + $0xf0] sm:$0xff]  ;;  %v117_v61 = vadd.f32 %v116_v40, %v1345_v51  ;;  %v131_v62 = vadd.f32 %v130_v41, %v1347_v52  ;;  %v1382_v40 = vmul.f32 %v1302_v30, %v1302_v30 }
  0x46   :  { %2196 = vst [vmem:[#allocation38_spill] sm:$0xff] %v1316_v36  ;;  %2197 = vst [vmem:[#allocation39_spill] sm:$0xff] %v1318_v37  ;;  %v1360_v59 = vld [vmem:[#allocation2 + $0xf8] sm:$0xff]  ;;  %v1362_v60 = vld [vmem:[#allocation2 + $0x100] sm:$0xff]  ;;  %v144_v63 = vadd.f32 %v143_v47, %v1349_v53  ;;  %v157_v33 = vadd.f32 %v156_v48, %v1358_v58 }
  0x47   :  { %2198 = vst [vmem:[#allocation40_spill] sm:$0xff] %v1320_v38  ;;  %2199 = vst [vmem:[#allocation41_spill] sm:$0xff] %v1322_v39  ;;  %v1371_v26 = vld [vmem:[#allocation2 + $0x108] sm:$0xff]  ;;  %v1373_v27 = vld [vmem:[#allocation2 + $0x110] sm:$0xff]  ;;  %v170_v34 = vadd.f32 %v169_v49, %v1360_v59  ;;  %v183_v35 = vadd.f32 %v182_v54, %v1362_v60  ;;  %v1395_v49 = vmul.f32 %v1304_v31, %v1304_v31 }
  0x48   :  { %2200 = vst [vmem:[#allocation42_spill] sm:$0xff] %v1330_v43  ;;  %2201 = vst [vmem:[#allocation43_spill] sm:$0xff] %v1332_v44  ;;  %v1375_v28 = vld [vmem:[#allocation2 + $0x120] sm:$0xff]  ;;  %v1384_v41 = vld [vmem:[#allocation2 + $0x128] sm:$0xff]  ;;  %v196_v25 = vadd.f32 %v195_v55, %v1371_v26  ;;  %v209_v48 = vadd.f32 %v208_v56, %v1373_v27  ;;  %v1408_v55 = vmul.f32 %v1306_v32, %v1306_v32 }
  0x49   :  { %2202 = vst [vmem:[#allocation44_spill] sm:$0xff] %v1334_v45  ;;  %2203 = vst [vmem:[#allocation45_spill] sm:$0xff] %v1336_v46  ;;  %v1386_v42 = vld [vmem:[#allocation2 + $0x130] sm:$0xff]  ;;  %v1388_v47 = vld [vmem:[#allocation2 + $0x138] sm:$0xff]  ;;  %v118_v8 = vadd.f32 %v117_v61, %v1375_v28  ;;  %v132_v23 = vadd.f32 %v131_v62, %v1384_v41 }
  0x4a   :  { %2204 = vst [vmem:[#allocation46_spill] sm:$0xff] %v1343_v50  ;;  %2205 = vst [vmem:[#allocation47_spill] sm:$0xff] %v1345_v51  ;;  %v1397_v54 = vld [vmem:[#allocation2 + $0x140] sm:$0xff]  ;;  %v1399_v30 = vld [vmem:[#allocation2 + $0x148] sm:$0xff]  ;;  %v145_v18 = vadd.f32 %v144_v63, %v1386_v42  ;;  %v158_v61 = vadd.f32 %v157_v33, %v1388_v47  ;;  %v1421_v63 = vmul.f32 %v1318_v37, %v1318_v37 }
  0x4b   :  { %2206 = vst [vmem:[#allocation48_spill] sm:$0xff] %v1347_v52  ;;  %2207 = vst [vmem:[#allocation49_spill] sm:$0xff] %v1349_v53  ;;  %v1401_v24 = vld [vmem:[#allocation2 + $0x150] sm:$0xff]  ;;  %v1410_v56 = vld [vmem:[#allocation2 + $0x158] sm:$0xff]  ;;  %v171_v16 = vadd.f32 %v170_v34, %v1397_v54  ;;  %v184_v11 = vadd.f32 %v183_v35, %v1399_v30  ;;  %v1434_v35 = vmul.f32 %v1320_v38, %v1320_v38 }
  0x4c   :  { %2208 = vst [vmem:[#allocation50_spill] sm:$0xff] %v1356_v57  ;;  %2209 = vst [vmem:[#allocation51_spill] sm:$0xff] %v1358_v58  ;;  %v1412_v31 = vld [vmem:[#allocation2 + $0x168] sm:$0xff]  ;;  %v1414_v17 = vld [vmem:[#allocation2 + $0x170] sm:$0xff]  ;;  %v197_v62 = vadd.f32 %v196_v25, %v1401_v24  ;;  %v210_v34 = vadd.f32 %v209_v48, %v1410_v56 }
  0x4d   :  { %2210 = vst [vmem:[#allocation52_spill] sm:$0xff] %v1362_v60  ;;  %2211 = vst [vmem:[#allocation53_spill] sm:$0xff] %v1369_v19  ;;  %v1423_v33 = vld [vmem:[#allocation2 + $0x178] sm:$0xff]  ;;  %v1425_v32 = vld [vmem:[#allocation2 + $0x180] sm:$0xff]  ;;  %v119_v9 = vadd.f32 %v118_v8, %v1412_v31  ;;  %v133_v5 = vadd.f32 %v132_v23, %v1414_v17  ;;  %v1447_v23 = vmul.f32 %v1322_v39, %v1322_v39 }
  0x4e   :  { %2212 = vst [vmem:[#allocation54_spill] sm:$0xff] %v1371_v26  ;;  %2213 = vst [vmem:[#allocation55_spill] sm:$0xff] %v1373_v27  ;;  %v1427_v10 = vld [vmem:[#allocation2 + $0x188] sm:$0xff]  ;;  %v1436_v25 = vld [vmem:[#allocation2 + $0x190] sm:$0xff]  ;;  %v146_v3 = vadd.f32 %v145_v18, %v1423_v33  ;;  %v159_v2 = vadd.f32 %v158_v61, %v1425_v32  ;;  %v1460_v61 = vmul.f32 %v1332_v44, %v1332_v44 }
  0x4f   :  { %2214 = vst [vmem:[#allocation56_spill] sm:$0xff] %v1375_v28  ;;  %2215 = vst [vmem:[#allocation57_spill] sm:$0xff] %v1382_v40  ;;  %v1438_v37 = vld [vmem:[#allocation2 + $0x198] sm:$0xff]  ;;  %v1440_v4 = vld [vmem:[#allocation2 + $0x1a0] sm:$0xff]  ;;  %v172_v8 = vadd.f32 %v171_v16, %v1427_v10  ;;  %v185_v0 = vadd.f32 %v184_v11, %v1436_v25  ;;  %v1470_v19 = vmul.f32 %v1334_v45, %v1334_v45 }
  0x50   :  { %2216 = vst [vmem:[#allocation58_spill] sm:$0xff] %v1384_v41  ;;  %2217 = vst [vmem:[#allocation59_spill] sm:$0xff] %v1395_v49  ;;  %v1449_v48 = vld [vmem:[#allocation2 + $0x1b0] sm:$0x1]  ;;  %v1451_v38 = vld [vmem:[#allocation2 + $0x1b8] sm:$0x1]  ;;  %v198_v40 = vadd.f32 %v197_v62, %v1438_v37  ;;  %v211_v18 = vadd.f32 %v210_v34, %v1440_v4  ;;  %v1474_v11 = vmul.f32 %v1336_v46, %v1336_v46 }
  0x51   :  { %2218 = vst [vmem:[#allocation60_spill] sm:$0xff] %v1408_v55  ;;  %2219 = vst [vmem:[#allocation61_spill] sm:$0xff] %v1421_v63  ;;  %v1453_v1 = vld [vmem:[#allocation2 + $0x1c0] sm:$0x1]  ;;  %v1462_v16 = vld [vmem:[#allocation2 + $0x1c8] sm:$0x1]  ;;  %v1478_v62 = vmul.f32 %v1345_v51, %v1345_v51  ;;  %v1482_v34 = vmul.f32 %v1347_v52, %v1347_v52  ;;  %v1490_v45 = vmul.f32 %v1349_v53, %v1349_v53 }
  0x52   :  { %2220 = vst [vmem:[#allocation62_spill] sm:$0xff] %v1434_v35  ;;  %2221 = vst [vmem:[#allocation63_spill] sm:$0xff] %v1447_v23  ;;  %v1464_v39 = vld [vmem:[#allocation2 + $0x1d0] sm:$0x1]  ;;  %v1466_v21 = vld [vmem:[#allocation2 + $0x1d8] sm:$0x1]  ;;  %v1494_v46 = vmul.f32 %v1358_v58, %v1358_v58 }
  0x53   :  { %2222 = vst [vmem:[#allocation64_spill] sm:$0xff] %v1460_v61  ;;  %2223 = vst [vmem:[#allocation65_spill] sm:$0xff] %v1470_v19  ;;  %v121_v44 = vsel %vm120_vm0, %v1449_v48, 0.0  ;;  %v134_v20 = vsel %vm120_vm0, %v1451_v38, 0.0  ;;  %v1496_v51 = vld [vmem:[#allocation2 + $0x1e0] sm:$0x1] }
  0x54   :  { %2224 = vst [vmem:[#allocation66_spill] sm:$0xff] %v1474_v11  ;;  %2225 = vst [vmem:[#allocation67_spill] sm:$0xff] %v1478_v62  ;;  %v1498_v11 = vld [vmem:[#allocation2 + $0x1e8] sm:$0x1]  ;;  %v122_v52 = vadd.f32 %v121_v44, %v119_v9  ;;  %v135_v19 = vadd.f32 %v134_v20, %v133_v5  ;;  %v147_v61 = vsel %vm120_vm0, %v1453_v1, 0.0  ;;  %v173_v53 = vsel %vm120_vm0, %v1464_v39, 0.0 }
  0x55   :  { %2226 = vst [vmem:[#allocation68_spill] sm:$0xff] %v1482_v34  ;;  %2227 = vst [vmem:[#allocation69_spill] sm:$0xff] %v1490_v45  ;;  %v160_v34 = vsel %vm120_vm0, %v1462_v16, 0.0  ;;  %v148_v23 = vadd.f32 %v147_v61, %v146_v3  ;;  %v186_v58 = vsel %vm120_vm0, %v1466_v21, 0.0  ;;  %v174_v62 = vadd.f32 %v173_v53, %v172_v8 }
  0x56   :  { %2228 = vst [vmem:[#allocation70_spill] sm:$0xff] %v1494_v46  ;;  %v161_v35 = vadd.f32 %v160_v34, %v159_v2  ;;  %v123_v46 = vrot.slane %v122_v52, 4  ;;  %v136_v45 = vrot.slane %v135_v19, 4  ;;  %v187_v57 = vadd.f32 %v186_v58, %v185_v0 }
  0x57   :  { %v149_v9 = vrot.slane %v148_v23, 4  ;;  %v199_v20 = vsel %vm120_vm0, %v1496_v51, 0.0  ;;  %v212_v44 = vsel %vm120_vm0, %v1498_v11, 0.0  ;;  %v175_v61 = vrot.slane %v174_v62, 4 }
  0x58   :  { %v162_v5 = vrot.slane %v161_v35, 4  ;;  %v124_v3 = vadd.f32 %v123_v46, %v122_v52  ;;  %v137_v2 = vadd.f32 %v136_v45, %v135_v19  ;;  %v188_v34 = vrot.slane %v187_v57, 4 }
  0x59   :  { %v150_v15 = vadd.f32 %v149_v9, %v148_v23  ;;  %v200_v55 = vadd.f32 %v199_v20, %v198_v40  ;;  %v213_v50 = vadd.f32 %v212_v44, %v211_v18  ;;  %v176_v53 = vadd.f32 %v175_v61, %v174_v62 }
  0x5a   :  { %v163_v63 = vadd.f32 %v162_v5, %v161_v35  ;;  %v125_v14 = vrot.slane %v124_v3, 2  ;;  %v138_v43 = vrot.slane %v137_v2, 2  ;;  %v189_v0 = vadd.f32 %v188_v34, %v187_v57 }
  0x5b   :  { %v151_v58 = vrot.slane %v150_v15, 2  ;;  %v201_v13 = vrot.slane %v200_v55, 4  ;;  %v214_v49 = vrot.slane %v213_v50, 4  ;;  %v177_v29 = vrot.slane %v176_v53, 2 }
  0x5c   :  { %v164_v8 = vrot.slane %v163_v63, 2  ;;  %v126_v36 = vadd.f32 %v125_v14, %v124_v3  ;;  %v139_v12 = vadd.f32 %v138_v43, %v137_v2  ;;  %v190_v7 = vrot.slane %v189_v0, 2 }
  0x5d   :  { %v152_v46 = vadd.f32 %v151_v58, %v150_v15  ;;  %v202_v52 = vadd.f32 %v201_v13, %v200_v55  ;;  %v215_v19 = vadd.f32 %v214_v49, %v213_v50  ;;  %v178_v40 = vadd.f32 %v177_v29, %v176_v53 }
  0x5e   :  { %v165_v45 = vadd.f32 %v164_v8, %v163_v63  ;;  %v127_v23 = vrot.slane %v126_v36, 1  ;;  %v140_v35 = vrot.slane %v139_v12, 1  ;;  %v191_v18 = vadd.f32 %v190_v7, %v189_v0 }
  0x5f   :  { %v153_v9 = vrot.slane %v152_v46, 1  ;;  %v203_v62 = vrot.slane %v202_v52, 2  ;;  %v216_v57 = vrot.slane %v215_v19, 2  ;;  %v179_v14 = vrot.slane %v178_v40, 1 }
  0x60   :  { %v166_v5 = vrot.slane %v165_v45, 1  ;;  %v1512_v20 = vadd.f32 %v127_v23, %v126_v36  ;;  %v1514_v44 = vadd.f32 %v140_v35, %v139_v12  ;;  %v192_v43 = vrot.slane %v191_v18, 1  ;;  %v2229_v35 = vld [vmem:[#allocation18_spill] sm:$0xff] }
  0x61   :  { %v1516_v3 = vadd.f32 %v153_v9, %v152_v46  ;;  %v204_v13 = vadd.f32 %v203_v62, %v202_v52  ;;  %v217_v50 = vadd.f32 %v216_v57, %v215_v19  ;;  %v1520_v49 = vadd.f32 %v179_v14, %v178_v40  ;;  %v2232_v9 = vld [vmem:[#allocation38_spill] sm:$0xff]  ;;  %v2234_v57 = vld [vmem:[#allocation23_spill] sm:$0xff] }
  0x62   :  { %v1518_v15 = vadd.f32 %v166_v5, %v165_v45  ;;  %v1522_v29 = vadd.f32 %v192_v43, %v191_v18  ;;  %v272_v7 = vmul.f32 %v1360_v59, %v1360_v59  ;;  %v273_v36 = vmul.f32 %v1362_v60, %v1362_v60  ;;  %v2231_v18 = vld [vmem:[#allocation22_spill] sm:$0xff] }
  0x63   :  { %v205_v12 = vrot.slane %v204_v13, 1  ;;  %v218_v55 = vrot.slane %v217_v50, 1  ;;  %v1530_v63 = vmul.f32 %v1371_v26, %v1371_v26  ;;  %v1534_v2 = vmul.f32 %v1373_v27, %v1373_v27  ;;  %v2250_v26 = vld [vmem:[#allocation70_spill] sm:$0xff] }
  0x64   :  { %v277_v61 = vmul.f32 %v1375_v28, %v1375_v28  ;;  %v278_v34 = vmul.f32 %v1384_v41, %v1384_v41  ;;  %v279_v53 = vmul.f32 %v1386_v42, %v1386_v42  ;;  %v280_v0 = vmul.f32 %v1388_v47, %v1388_v47  ;;  %v2244_v41 = vld [vmem:[#allocation63_spill] sm:$0xff] }
  0x65   :  { %v1544_v58 = vadd.f32 %v205_v12, %v204_v13  ;;  %v1546_v8 = vadd.f32 %v218_v55, %v217_v50  ;;  %v281_v46 = vmul.f32 %v1397_v54, %v1397_v54  ;;  %v282_v45 = vmul.f32 %v1399_v30, %v1399_v30  ;;  %v2238_v50 = vld [vmem:[#allocation60_spill] sm:$0xff]  ;;  %v2239_v55 = vld [vmem:[#allocation61_spill] sm:$0xff] }
  0x66   :  { %v1554_v52 = vmul.f32 %v1401_v24, %v1401_v24  ;;  %v1558_v42 = vmul.f32 %v1410_v56, %v1410_v56  ;;  %v286_v47 = vmul.f32 %v1412_v31, %v1412_v31  ;;  %v287_v19 = vmul.f32 %v1414_v17, %v1414_v17 }
  0x67   :  { %v288_v54 = vmul.f32 %v1423_v33, %v1423_v33  ;;  %v289_v30 = vmul.f32 %v1425_v32, %v1425_v32  ;;  %v290_v24 = vmul.f32 %v1427_v10, %v1427_v10  ;;  %v291_v23 = vmul.f32 %v1436_v25, %v1436_v25 }
  0x68   :  { %v1574_v56 = vmul.f32 %v1438_v37, %v1438_v37  ;;  %v1578_v31 = vmul.f32 %v1440_v4, %v1440_v4  ;;  %v295_v17 = vmul.f32 %v1449_v48, %v1449_v48  ;;  %v296_v32 = vmul.f32 %v1451_v38, %v1451_v38 }
  0x69   :  { %v297_v10 = vmul.f32 %v1453_v1, %v1453_v1  ;;  %v298_v33 = vmul.f32 %v1462_v16, %v1462_v16  ;;  %v299_v37 = vmul.f32 %v1464_v39, %v1464_v39  ;;  %v300_v25 = vmul.f32 %v1466_v21, %v1466_v21  ;;  %v2230_v16 = vld [vmem:[#allocation34_spill] sm:$0xff] }
  0x6a   :  { %v301_v4 = vmul.f32 %v1496_v51, %v1496_v51  ;;  %v1596_v48 = vmul.f32 %v1498_v11, %v1498_v11  ;;  %v304_v38 = vadd.f32 %v1284_v22, %v1238_v6  ;;  %v309_v1 = vsel %vm120_vm0, %v295_v17, 0.0  ;;  %v2233_v51 = vld [vmem:[#allocation59_spill] sm:$0xff]  ;;  %v2235_v11 = vld [vmem:[#allocation42_spill] sm:$0xff]  ;;  %v2236_v6 = vld [vmem:[#allocation24_spill] sm:$0xff] }
  0x6b   :  { %v317_v40 = vadd.f32 %v2230_v16, %v2229_v35  ;;  %v322_v39 = vsel %vm120_vm0, %v296_v32, 0.0  ;;  %v330_v21 = vadd.f32 %v2232_v9, %v2231_v18  ;;  %v335_v5 = vsel %vm120_vm0, %v297_v10, 0.0  ;;  %v2237_v22 = vld [vmem:[#allocation46_spill] sm:$0xff]  ;;  %v2240_v35 = vld [vmem:[#allocation25_spill] sm:$0xff]  ;;  %v2242_v10 = vld [vmem:[#allocation67_spill] sm:$0xff] }
  0x6c   :  { %v305_v62 = vadd.f32 %v304_v38, %v2233_v51  ;;  %v343_v14 = vadd.f32 %v2235_v11, %v2234_v57  ;;  %v348_v43 = vsel %vm120_vm0, %v298_v33, 0.0  ;;  %v356_v13 = vadd.f32 %v2237_v22, %v2236_v6  ;;  %v2241_v16 = vld [vmem:[#allocation50_spill] sm:$0xff]  ;;  %v2245_v11 = vld [vmem:[#allocation68_spill] sm:$0xff]  ;;  %v2246_v6 = vld [vmem:[#allocation69_spill] sm:$0xff] }
  0x6d   :  { %v318_v12 = vadd.f32 %v317_v40, %v2238_v50  ;;  %v331_v17 = vadd.f32 %v330_v21, %v2239_v55  ;;  %v361_v32 = vsel %vm120_vm0, %v299_v37, 0.0  ;;  %v369_v18 = vadd.f32 %v2241_v16, %v2240_v35  ;;  %v2243_v38 = vld [vmem:[#allocation62_spill] sm:$0xff]  ;;  %v2247_v40 = vld [vmem:[#allocation64_spill] sm:$0xff]  ;;  %v2248_v21 = vld [vmem:[#allocation29_spill] sm:$0xff] }
  0x6e   :  { %v306_v9 = vadd.f32 %v305_v62, %v2242_v10  ;;  %v344_v51 = vadd.f32 %v343_v14, %v2243_v38  ;;  %v357_v57 = vadd.f32 %v356_v13, %v2244_v41  ;;  %v374_v33 = vsel %vm120_vm0, %v300_v25, 0.0  ;;  %v2249_v55 = vld [vmem:[#allocation53_spill] sm:$0xff] }
  0x6f   :  { %v319_v28 = vadd.f32 %v318_v12, %v2245_v11  ;;  %v332_v22 = vadd.f32 %v331_v17, %v2246_v6  ;;  %v370_v50 = vadd.f32 %v369_v18, %v2247_v40  ;;  %v382_v37 = vadd.f32 %v2249_v55, %v2248_v21  ;;  %v2251_v13 = vld [vmem:[#allocation65_spill] sm:$0xff]  ;;  %v2252_v17 = vld [vmem:[#allocation30_spill] sm:$0xff] }
  0x70   :  { %v307_v27 = vadd.f32 %v306_v9, %v277_v61  ;;  %v345_v35 = vadd.f32 %v344_v51, %v2250_v26  ;;  %v358_v16 = vadd.f32 %v357_v57, %v272_v7  ;;  %v387_v62 = vsel %vm120_vm0, %v301_v4, 0.0  ;;  %v2253_v6 = vld [vmem:[#allocation57_spill] sm:$0xff]  ;;  %v2254_v4 = vld [vmem:[#allocation66_spill] sm:$0xff] }
  0x71   :  { %v320_v14 = vadd.f32 %v319_v28, %v278_v34  ;;  %v333_v10 = vadd.f32 %v332_v22, %v279_v53  ;;  %v371_v41 = vadd.f32 %v370_v50, %v273_v36  ;;  %v383_v25 = vadd.f32 %v382_v37, %v2251_v13 }
  0x72   :  { %v308_v38 = vadd.f32 %v307_v27, %v286_v47  ;;  %v346_v12 = vadd.f32 %v345_v35, %v280_v0  ;;  %v359_v11 = vadd.f32 %v358_v16, %v281_v46  ;;  %v395_v18 = vadd.f32 %v2253_v6, %v2252_v17 }
  0x73   :  { %v321_v40 = vadd.f32 %v320_v14, %v287_v19  ;;  %v334_v60 = vadd.f32 %v333_v10, %v288_v54  ;;  %v372_v21 = vadd.f32 %v371_v41, %v282_v45  ;;  %v384_v61 = vadd.f32 %v383_v25, %v1530_v63 }
  0x74   :  { %v310_v26 = vadd.f32 %v309_v1, %v308_v38  ;;  %v347_v7 = vadd.f32 %v346_v12, %v289_v30  ;;  %v360_v9 = vadd.f32 %v359_v11, %v290_v24  ;;  %v396_v28 = vadd.f32 %v395_v18, %v2254_v4 }
  0x75   :  { %v323_v34 = vadd.f32 %v322_v39, %v321_v40  ;;  %v336_v36 = vadd.f32 %v335_v5, %v334_v60  ;;  %v373_v53 = vadd.f32 %v372_v21, %v291_v23  ;;  %v385_v27 = vadd.f32 %v384_v61, %v1554_v52 }
  0x76   :  { %v311_v0 = vrot.slane %v310_v26, 4  ;;  %v349_v46 = vadd.f32 %v348_v43, %v347_v7  ;;  %v362_v47 = vadd.f32 %v361_v32, %v360_v9  ;;  %v397_v51 = vadd.f32 %v396_v28, %v1534_v2 }
  0x77   :  { %v324_v19 = vrot.slane %v323_v34, 4  ;;  %v337_v54 = vrot.slane %v336_v36, 4  ;;  %v375_v45 = vadd.f32 %v374_v33, %v373_v53  ;;  %v386_v63 = vadd.f32 %v385_v27, %v1574_v56 }
  0x78   :  { %v312_v1 = vadd.f32 %v311_v0, %v310_v26  ;;  %v350_v30 = vrot.slane %v349_v46, 4  ;;  %v363_v24 = vrot.slane %v362_v47, 4  ;;  %v398_v57 = vadd.f32 %v397_v51, %v1558_v42 }
  0x79   :  { %v325_v39 = vadd.f32 %v324_v19, %v323_v34  ;;  %v338_v60 = vadd.f32 %v337_v54, %v336_v36  ;;  %v376_v23 = vrot.slane %v375_v45, 4  ;;  %v388_v5 = vadd.f32 %v387_v62, %v386_v63 }
  0x7a   :  { %v313_v52 = vrot.slane %v312_v1, 2  ;;  %v351_v22 = vadd.f32 %v350_v30, %v349_v46  ;;  %v364_v43 = vadd.f32 %v363_v24, %v362_v47  ;;  %v399_v32 = vadd.f32 %v398_v57, %v1578_v31 }
  0x7b   :  { %v326_v2 = vrot.slane %v325_v39, 2  ;;  %v339_v50 = vrot.slane %v338_v60, 2  ;;  %v377_v55 = vadd.f32 %v376_v23, %v375_v45  ;;  %v389_v33 = vrot.slane %v388_v5, 4 }
  0x7c   :  { %v314_v37 = vadd.f32 %v313_v52, %v312_v1  ;;  %v352_v56 = vrot.slane %v351_v22, 2  ;;  %v365_v35 = vrot.slane %v364_v43, 2  ;;  %v400_v16 = vsel %vm120_vm0, %v1596_v48, 0.0 }
  0x7d   :  { %v327_v42 = vadd.f32 %v326_v2, %v325_v39  ;;  %v340_v14 = vadd.f32 %v339_v50, %v338_v60  ;;  %v378_v10 = vrot.slane %v377_v55, 2  ;;  %v390_v41 = vadd.f32 %v389_v33, %v388_v5  ;;  %v1681_v50 = vld [vmem:[#allocation2 + $0x40] sm:$0xff] }
  0x7e   :  { %v315_v62 = vrot.slane %v314_v37, 1  ;;  %v353_v13 = vadd.f32 %v352_v56, %v351_v22  ;;  %v366_v25 = vadd.f32 %v365_v35, %v364_v43  ;;  %v401_v38 = vadd.f32 %v400_v16, %v399_v32  ;;  %v1683_v16 = vld [vmem:[#allocation2 + $0x88] sm:$0xff] }
  0x7f   :  { %v328_v12 = vrot.slane %v327_v42, 1  ;;  %v341_v31 = vrot.slane %v340_v14, 1  ;;  %v379_v11 = vadd.f32 %v378_v10, %v377_v55  ;;  %v391_v17 = vrot.slane %v390_v41, 2 }
  0x80   :  { %v316_v6 = vadd.f32 %v315_v62, %v314_v37  ;;  %v354_v18 = vrot.slane %v353_v13, 1  ;;  %v367_v40 = vrot.slane %v366_v25, 1  ;;  %v402_v21 = vrot.slane %v401_v38, 4 }
  0x81   :  { %v329_v61 = vadd.f32 %v328_v12, %v327_v42  ;;  %v342_v26 = vadd.f32 %v341_v31, %v340_v14  ;;  %v380_v7 = vrot.slane %v379_v11, 1  ;;  %v392_v48 = vadd.f32 %v391_v17, %v390_v41  ;;  %v1685_v42 = vld [vmem:[#allocation2 + $0xd0] sm:$0xff]  ;;  %v1689_v17 = vld [vmem:[#allocation2 + $0x118] sm:$0xff] }
  0x82   :  { %v355_v9 = vadd.f32 %v354_v18, %v353_v13  ;;  %v368_v4 = vadd.f32 %v367_v40, %v366_v25  ;;  %v403_v28 = vadd.f32 %v402_v21, %v401_v38  ;;  %v1642_v34 = vmul.f32 0.020408163, %v1512_v20 }
  0x83   :  { %v381_v36 = vadd.f32 %v380_v7, %v379_v11  ;;  %v393_v53 = vrot.slane %v392_v48, 1  ;;  %v1645_v27 = vmul.f32 0.020408163, %v1514_v44  ;;  %v1648_v0 = vmul.f32 0.020408163, %v1516_v3 }
  0x84   :  { %v404_v46 = vrot.slane %v403_v28, 2  ;;  %v1651_v47 = vmul.f32 0.020408163, %v1518_v15  ;;  %v1654_v51 = vmul.f32 0.020408163, %v1520_v49  ;;  %v445_v19 = vmul.f32 %v1642_v34, %v1642_v34 }
  0x85   :  { %v394_v20 = vadd.f32 %v393_v53, %v392_v48  ;;  %v1659_v54 = vmul.f32 0.020408163, %v1522_v29  ;;  %v1662_v44 = vmul.f32 0.020408163, %v1544_v58  ;;  %v1665_v3 = vmul.f32 0.020408163, %v1546_v8 }
  0x86   :  { %v405_v45 = vadd.f32 %v404_v46, %v403_v28  ;;  %v436_v15 = vmul.f32 0.020408163, %v316_v6  ;;  %v437_v63 = vmul.f32 0.020408163, %v329_v61  ;;  %v438_v1 = vmul.f32 0.020408163, %v342_v26 }
  0x87   :  { %v439_v49 = vmul.f32 0.020408163, %v355_v9  ;;  %v440_v30 = vmul.f32 0.020408163, %v368_v4  ;;  %v441_v24 = vmul.f32 0.020408163, %v381_v36  ;;  %v446_v57 = vmul.f32 %v1645_v27, %v1645_v27 }
  0x88   :  { %v406_v39 = vrot.slane %v405_v45, 1  ;;  %v442_v60 = vmul.f32 0.020408163, %v394_v20  ;;  %v447_v29 = vmul.f32 %v1648_v0, %v1648_v0  ;;  %v448_v58 = vmul.f32 %v1651_v47, %v1651_v47  ;;  %v1697_v61 = vld [vmem:[#allocation2 + $0x160] sm:$0xff]  ;;  %v1706_v36 = vld [vmem:[#allocation2 + $0x1a8] sm:$0xff] }
  0x89   :  { %v449_v8 = vmul.f32 %v1654_v51, %v1654_v51  ;;  %v450_v23 = vmul.f32 %v1659_v54, %v1659_v54  ;;  %v451_v5 = vmul.f32 %v1662_v44, %v1662_v44  ;;  %v452_v52 = vmul.f32 %v1665_v3, %v1665_v3  ;;  %2255 = vst [vmem:[#allocation18_spill] sm:$0xff] %v1697_v61 }
  0x8a   :  { %v407_v22 = vadd.f32 %v406_v39, %v405_v45  ;;  %v454_v43 = vsub.f32 %v436_v15, %v445_v19  ;;  %v455_v32 = vsub.f32 %v437_v63, %v446_v57  ;;  %v456_v2 = vsub.f32 %v438_v1, %v447_v29  ;;  %2257 = vst [vmem:[#allocation34_spill] sm:$0xff] %v1706_v36  ;;  %v1716_v63 = vld [vmem:[#allocation2 + $0x1f0] sm:$0x1] }
  0x8b   :  { %v457_v55 = vsub.f32 %v439_v49, %v448_v58  ;;  %v458_v33 = vsub.f32 %v440_v30, %v449_v8  ;;  %v459_v37 = vsub.f32 %v441_v24, %v450_v23  ;;  %v1156_v56 = vmov 1966171168   ;;  %2258 = vst [vmem:[#allocation22_spill] sm:$0xff] %v1716_v63 }
  0x8c   :  { %v497_v35 = vunpack.c.l.s4 %v1156_v56  ;;  %v443_v14 = vmul.f32 0.020408163, %v407_v22  ;;  %v460_v10 = vsub.f32 %v442_v60, %v451_v5  ;;  %v463_v41 = vadd.f32 1e-05, %v454_v43 }
  0x8d   :  { %v464_v62 = vadd.f32 1e-05, %v455_v32  ;;  %v465_v13 = vadd.f32 1e-05, %v456_v2  ;;  %v466_v25 = vadd.f32 1e-05, %v457_v55  ;;  %v249_v38 = vmul.f32 %v1681_v50, %v1681_v50 }
  0x8e   :  { %v461_v12 = vsub.f32 %v443_v14, %v452_v52  ;;  %v467_v31 = vadd.f32 1e-05, %v458_v33  ;;  %v468_v11 = vadd.f32 1e-05, %v459_v37  ;;  %1017 = vrsqrt.f32 %v463_v41 }
  0x8f   :  { %1019 = vrsqrt.f32 %v464_v62  ;;  %v221_v6 = vsel %vm220_vm1, %v1681_v50, 0.0  ;;  %v222_v18 = vsel %vm220_vm1, %v1683_v16, 0.0  ;;  %v224_v40 = vsel %vm220_vm1, %v1685_v42, 0.0 }
  0x90   :  { %v469_v21 = vadd.f32 1e-05, %v460_v10  ;;  %1021 = vrsqrt.f32 %v465_v13  ;;  %v223_v26 = vadd.f32 %v222_v18, %v221_v6  ;;  %v258_v7 = vmul.f32 %v1683_v16, %v1683_v16 }
  0x91   :  { %v470_v48 = vadd.f32 1e-05, %v461_v12  ;;  %1023 = vrsqrt.f32 %v466_v25  ;;  %v2256_v9 = vlaneseq  ;;  %v226_v28 = vsel %vm220_vm1, %v1689_v17, 0.0 }
  0x92   :  { %1025 = vrsqrt.f32 %v467_v31  ;;  %v225_v53 = vadd.f32 %v224_v40, %v223_v26  ;;  %v267_v46 = vmul.f32 %v1685_v42, %v1685_v42  ;;  %v276_v19 = vmul.f32 %v1689_v17, %v1689_v17 }
  0x93   :  { %v1702_v4 = vshrl.u32 %v2256_v9, 7  ;;  %1027 = vrsqrt.f32 %v468_v11  ;;  %v498_v20 = vunpack.c.0.s8 %v497_v35  ;;  %v228_v45 = vsel %vm220_vm1, %v1697_v61, 0.0 }
  0x94   :  { %v285_v15 = vmul.f32 %v1697_v61, %v1697_v61  ;;  %1029 = vrsqrt.f32 %v469_v21  ;;  %v227_v1 = vadd.f32 %v226_v28, %v225_v53  ;;  %v408_v49 = vsel %vm220_vm1, %v249_v38, 0.0 }
  0x95   :  { %v409_v30 = vsel %vm220_vm1, %v258_v7, 0.0  ;;  %1031 = vrsqrt.f32 %v470_v48  ;;  %v230_v24 = vsel %vm220_vm1, %v1706_v36, 0.0  ;;  %v411_v39 = vsel %vm220_vm1, %v267_v46, 0.0 }
  0x96   :  { %v410_v57 = vadd.f32 %v409_v30, %v408_v49  ;;  %v229_v60 = vadd.f32 %v228_v45, %v227_v1  ;;  %v294_v29 = vmul.f32 %v1706_v36, %v1706_v36  ;;  %v413_v58 = vsel %vm220_vm1, %v276_v19, 0.0 }
  0x97   :  { %v233_v8 = vsel %vm232_vm2, %v1716_v63, 0.0  ;;  %v1729_v52 = vsub.s32 %v498_v20, %v1702_v4  ;;  %v303_v43 = vmul.f32 %v1716_v63, %v1716_v63  ;;  %v415_v32 = vsel %vm220_vm1, %v285_v15, 0.0 }
  0x98   :  { %v412_v23 = vadd.f32 %v411_v39, %v410_v57  ;;  %v1018_v5 = vpop.eup %1017  ;;  %v231_v22 = vadd.f32 %v230_v24, %v229_v60  ;;  %v417_v35 = vsel %vm220_vm1, %v294_v29, 0.0  ;;  %v481_v57 = vld [vmem:[#allocation5] sm:$0xff]  ;;  %v1743_v39 = vsub.s32 0, %v1702_v4 }
  0x99   :  { %v1020_v2 = vpop.eup %1019  ;;  %v419_v38 = vsel %vm232_vm2, %v303_v43, 0.0  ;;  %v569_v60 = vsub.s32 1, %v1702_v4  ;;  %v573_v29 = vsub.s32 2, %v1702_v4  ;;  %v2152_v43 = vsub.s32 5, %v1702_v4 }
  0x9a   :  { %v414_v55 = vadd.f32 %v413_v58, %v412_v23  ;;  %v1022_v33 = vpop.eup %1021  ;;  %v492_v37 = vcombine.low %v1018_v5, %v1020_v2  ;;  %v234_v56 = vadd.f32 %v233_v8, %v231_v22  ;;  %v577_v23 = vsub.s32 3, %v1702_v4 }
  0x9b   :  { %v1024_v14 = vpop.eup %1023  ;;  %v581_v5 = vsub.s32 4, %v1702_v4  ;;  %v2150_v2 = vsub.s32 7, %v1702_v4  ;;  %v2300_v36 = vsub.s32 6, %v1702_v4 }
  0x9c   :  { %v416_v10 = vadd.f32 %v415_v32, %v414_v55  ;;  %v1026_v41 = vpop.eup %1025  ;;  %v493_v62 = vcombine.low %v1022_v33, %v1024_v14  ;;  %v502_v13 = vrot.slane %v492_v37, %v1729_v52  ;;  %v235_v25 = vrot.slane %v234_v56, 4 }
  0x9d   :  { %v1028_v12 = vpop.eup %1027  ;;  %v2151_v32 = vsub.s32 6, %v1702_v4 }
  0x9e   :  { %v418_v31 = vadd.f32 %v417_v35, %v416_v10  ;;  %v1030_v11 = vpop.eup %1029  ;;  %v494_v6 = vcombine.low %v1026_v41, %v1028_v12  ;;  %v509_v18 = vrot.slane %v493_v62, %v1729_v52  ;;  %v236_v40 = vadd.f32 %v235_v25, %v234_v56 }
  0x9f   :  { %v1032_v21 = vpop.eup %1031 }
  0xa0   :  { %v420_v26 = vadd.f32 %v419_v38, %v418_v31  ;;  %v495_v7 = vcombine.low %v1030_v11, %v1032_v21  ;;  %v516_v48 = vrot.slane %v494_v6, %v1729_v52  ;;  %v524_v9 = vcombine.low %v502_v13, %v509_v18 }
  0xa1   :  { %v237_v28 = vrot.slane %v236_v40, 2 }
  0xa2   :  { %v421_v53 = vrot.slane %v420_v26, 4  ;;  %v523_v46 = vrot.slane %v495_v7, %v1729_v52  ;;  %v532_v15 = vrot.slane %v524_v9, %v1729_v52  ;;  %v2266_v7 = vld [vmem:[#allocation12_spill] sm:$0xff] }
  0xa3   :  { %v238_v19 = vadd.f32 %v237_v28, %v236_v40 }
  0xa4   :  { %v422_v20 = vadd.f32 %v421_v53, %v420_v26  ;;  %v525_v45 = vcombine.low %v516_v48, %v523_v46  ;;  %v2267_v48 = vld [vmem:[#allocation13_spill] sm:$0xff] }
  0xa5   :  { %v239_v1 = vrot.slane %v238_v19, 1 }
  0xa6   :  { %v423_v49 = vrot.slane %v422_v20, 2  ;;  %v539_v30 = vrot.slane %v525_v45, %v1729_v52  ;;  %v2271_v45 = vld [vmem:[#allocation17_spill] sm:$0xff] }
  0xa7   :  { %v240_v24 = vadd.f32 %v239_v1, %v238_v19  ;;  %v2270_v19 = vld [vmem:[#allocation16_spill] sm:$0xff] }
  0xa8   :  { %v424_v58 = vadd.f32 %v423_v49, %v422_v20  ;;  %v540_v8 = vcombine.low %v532_v15, %v539_v30  ;;  %v2272_v30 = vld [vmem:[#allocation19_spill] sm:$0xff] }
  0xa9   :  { %v1749_v22 = vmul.f32 0.020408163, %v240_v24 }
  0xaa   :  { %v425_v55 = vrot.slane %v424_v58, 1  ;;  %v557_v33 = vmul.f32 %v540_v8, %v481_v57  ;;  %v2273_v57 = vld [vmem:[#allocation20_spill] sm:$0xff] }
  0xab   :  { %v453_v56 = vmul.f32 %v1749_v22, %v1749_v22 }
  0xac   :  { %v426_v37 = vadd.f32 %v425_v55, %v424_v58  ;;  %v1757_v35 = vrot.slane %v557_v33, %v1743_v39  ;;  %v1761_v14 = vrot.slane %v557_v33, %v569_v60  ;;  %v1765_v10 = vrot.slane %v557_v33, %v573_v29 }
  0xad   :  { %v1769_v41 = vrot.slane %v557_v33, %v577_v23  ;;  %v1773_v62 = vrot.slane %v557_v33, %v581_v5  ;;  %v1777_v13 = vrot.slane %v557_v33, %v2152_v43  ;;  %v1781_v25 = vrot.slane %v557_v33, %v2151_v32  ;;  %v2296_v32 = vld [vmem:[#allocation55_spill] sm:$0xff] }
  0xae   :  { %2259 = vst [vmem:[#allocation38_spill] sm:$0xff] %v1757_v35  ;;  %2260 = vst [vmem:[#allocation59_spill] sm:$0xff] %v1761_v14  ;;  %v1785_v38 = vrot.slane %v557_v33, %v2150_v2  ;;  %v608_v12 = vmul.f32 %v1757_v35, %v1642_v34  ;;  %v609_v31 = vmul.f32 %v1761_v14, %v1645_v27  ;;  %v444_v55 = vmul.f32 0.020408163, %v426_v37  ;;  %v2274_v33 = vld [vmem:[#allocation21_spill] sm:$0xff]  ;;  %v2295_v2 = vld [vmem:[#allocation54_spill] sm:$0xff] }
  0xaf   :  { %2261 = vst [vmem:[#allocation23_spill] sm:$0xff] %v1769_v41  ;;  %2262 = vst [vmem:[#allocation42_spill] sm:$0xff] %v1773_v62  ;;  %v610_v11 = vmul.f32 %v1765_v10, %v1648_v0  ;;  %v611_v6 = vmul.f32 %v1769_v41, %v1651_v47  ;;  %v612_v18 = vmul.f32 %v1773_v62, %v1654_v51  ;;  %v2268_v51 = vld [vmem:[#allocation14_spill] sm:$0xff] }
  0xb0   :  { %2263 = vst [vmem:[#allocation24_spill] sm:$0xff] %v1777_v13  ;;  %2264 = vst [vmem:[#allocation46_spill] sm:$0xff] %v1781_v25  ;;  %v613_v40 = vmul.f32 %v1777_v13, %v1659_v54  ;;  %v614_v21 = vmul.f32 %v1781_v25, %v1662_v44  ;;  %v615_v34 = vmul.f32 %v1785_v38, %v1665_v3  ;;  %v2269_v54 = vld [vmem:[#allocation15_spill] sm:$0xff] }
  0xb1   :  { %2265 = vst [vmem:[#allocation60_spill] sm:$0xff] %v1785_v38  ;;  %v626_v26 = vcombine.low %v608_v12, %v609_v31  ;;  %v627_v27 = vcombine.low %v610_v11, %v611_v6  ;;  %v693_v0 = vmul.f32 %v1757_v35, %v2266_v7  ;;  %v694_v47 = vmul.f32 %v1761_v14, %v2267_v48  ;;  %v2275_v31 = vld [vmem:[#allocation26_spill] sm:$0xff]  ;;  %v2279_v48 = vld [vmem:[#allocation32_spill] sm:$0xff] }
  0xb2   :  { %v628_v9 = vcombine.low %v612_v18, %v613_v40  ;;  %v629_v28 = vcombine.low %v614_v21, %v615_v34  ;;  %v695_v53 = vmul.f32 %v1765_v10, %v2268_v51  ;;  %v696_v46 = vmul.f32 %v1769_v41, %v2269_v54  ;;  %v2276_v18 = vld [vmem:[#allocation27_spill] sm:$0xff]  ;;  %v2277_v21 = vld [vmem:[#allocation28_spill] sm:$0xff] }
  0xb3   :  { %v636_v44 = vrot.slane %v626_v26, %v1729_v52  ;;  %v643_v3 = vrot.slane %v627_v27, %v1729_v52  ;;  %v697_v20 = vmul.f32 %v1773_v62, %v2270_v19  ;;  %v698_v15 = vmul.f32 %v1777_v13, %v2271_v45  ;;  %v2278_v26 = vld [vmem:[#allocation31_spill] sm:$0xff]  ;;  %v2282_v19 = vld [vmem:[#allocation36_spill] sm:$0xff] }
  0xb4   :  { %v650_v1 = vrot.slane %v628_v9, %v1729_v52  ;;  %v657_v49 = vrot.slane %v629_v28, %v1729_v52  ;;  %v699_v24 = vmul.f32 %v1781_v25, %v2272_v30  ;;  %v700_v58 = vmul.f32 %v1785_v38, %v2273_v57  ;;  %v2280_v28 = vld [vmem:[#allocation33_spill] sm:$0xff]  ;;  %v2284_v57 = vld [vmem:[#allocation39_spill] sm:$0xff] }
  0xb5   :  { %v658_v8 = vcombine.low %v636_v44, %v643_v3  ;;  %v1825_v12 = vmul.f32 %v1757_v35, %v2274_v33  ;;  %v1829_v11 = vmul.f32 %v1761_v14, %v2275_v31  ;;  %v704_v40 = vmul.f32 %v1765_v10, %v2276_v18  ;;  %v2281_v44 = vld [vmem:[#allocation35_spill] sm:$0xff]  ;;  %v2286_v31 = vld [vmem:[#allocation41_spill] sm:$0xff] }
  0xb6   :  { %v659_v6 = vcombine.low %v650_v1, %v657_v49  ;;  %v705_v34 = vmul.f32 %v1769_v41, %v2277_v21  ;;  %v1837_v27 = vmul.f32 %v1773_v62, %v2278_v26  ;;  %v462_v7 = vsub.f32 %v444_v55, %v453_v56  ;;  %v2283_v1 = vld [vmem:[#allocation37_spill] sm:$0xff]  ;;  %v559_v49 = vld [vmem:[#allocation7] sm:$0xff] }
  0xb7   :  { %v666_v37 = vrot.slane %v658_v8, %v1729_v52  ;;  %v1842_v9 = vmul.f32 %v1777_v13, %v2279_v48  ;;  %v1846_v51 = vmul.f32 %v1781_v25, %v2280_v28  ;;  %v1851_v3 = vmul.f32 %v1785_v38, %v2281_v44  ;;  %v2285_v55 = vld [vmem:[#allocation40_spill] sm:$0xff]  ;;  %v2287_v21 = vld [vmem:[#allocation43_spill] sm:$0xff]  ;;  %v2289_v28 = vld [vmem:[#allocation45_spill] sm:$0xff] }
  0xb8   :  { %v673_v54 = vrot.slane %v659_v6, %v1729_v52  ;;  %v1855_v45 = vmul.f32 %v1757_v35, %v2282_v19  ;;  %v1859_v56 = vmul.f32 %v1761_v14, %v2283_v1  ;;  %v471_v30 = vadd.f32 1e-05, %v462_v7  ;;  %v2288_v48 = vld [vmem:[#allocation44_spill] sm:$0xff]  ;;  %v2290_v19 = vld [vmem:[#allocation47_spill] sm:$0xff] }
  0xb9   :  { %v1863_v8 = vmul.f32 %v1765_v10, %v2284_v57  ;;  %v1867_v33 = vmul.f32 %v1769_v41, %v2285_v55  ;;  %v1871_v6 = vmul.f32 %v1773_v62, %v2286_v31  ;;  %v1875_v26 = vmul.f32 %v1777_v13, %v2287_v21  ;;  %v2291_v57 = vld [vmem:[#allocation48_spill] sm:$0xff]  ;;  %v2293_v21 = vld [vmem:[#allocation51_spill] sm:$0xff] }
  0xba   :  { %v674_v18 = vcombine.low %v666_v37, %v673_v54  ;;  %v1879_v7 = vmul.f32 %v1781_v25, %v2288_v48  ;;  %v1883_v44 = vmul.f32 %v1785_v38, %v2289_v28  ;;  %1033 = vrsqrt.f32 %v471_v30  ;;  %v2292_v54 = vld [vmem:[#allocation49_spill] sm:$0xff]  ;;  %v2294_v28 = vld [vmem:[#allocation52_spill] sm:$0xff] }
  0xbb   :  { %v1887_v1 = vmul.f32 %v1757_v35, %v2290_v19  ;;  %v1891_v37 = vmul.f32 %v1761_v14, %v2291_v57  ;;  %v1895_v55 = vmul.f32 %v1765_v10, %v2292_v54  ;;  %v1899_v48 = vmul.f32 %v1769_v41, %v2293_v21  ;;  %v2298_v21 = vld [vmem:[#allocation58_spill] sm:$0xff] }
  0xbc   :  { %v691_v31 = vsub.f32 %v559_v49, %v674_v18  ;;  %v1903_v30 = vmul.f32 %v1773_v62, %v1360_v59  ;;  %v1907_v19 = vmul.f32 %v1777_v13, %v2294_v28  ;;  %v1911_v57 = vmul.f32 %v1781_v25, %v2295_v2  ;;  %v2297_v49 = vld [vmem:[#allocation56_spill] sm:$0xff] }
  0xbd   :  { %v1915_v54 = vmul.f32 %v1785_v38, %v2296_v32  ;;  %v1919_v18 = vmul.f32 %v1757_v35, %v2297_v49  ;;  %v1923_v59 = vmul.f32 %v1761_v14, %v2298_v21  ;;  %v2299_v21 = vsub.s32 5, %v1702_v4 }
  0xbe   :  { %v1926_v43 = vrot.slane %v691_v31, %v1743_v39  ;;  %v1930_v28 = vrot.slane %v691_v31, %v569_v60  ;;  %v1934_v2 = vrot.slane %v691_v31, %v573_v29  ;;  %v1938_v32 = vrot.slane %v691_v31, %v577_v23 }
  0xbf   :  { %v1942_v49 = vrot.slane %v691_v31, %v581_v5  ;;  %v1946_v63 = vrot.slane %v691_v31, %v2299_v21  ;;  %v1950_v60 = vrot.slane %v691_v31, %v2300_v36  ;;  %v2301_v14 = vsub.s32 7, %v1702_v4 }
  0xc0   :  { %v803_v35 = vadd.f32 %v1926_v43, %v693_v0  ;;  %v804_v23 = vadd.f32 %v1930_v28, %v694_v47  ;;  %v805_v61 = vadd.f32 %v1934_v2, %v695_v53  ;;  %v806_v5 = vadd.f32 %v1938_v32, %v696_v46 }
  0xc1   :  { %v1954_v29 = vrot.slane %v691_v31, %v2301_v14  ;;  %v807_v38 = vadd.f32 %v1942_v49, %v697_v20  ;;  %v808_v21 = vadd.f32 %v1946_v63, %v698_v15  ;;  %v809_v25 = vadd.f32 %v1950_v60, %v699_v24 }
  0xc2   :  { %v866_v13 = vmax.f32 %v803_v35, 0.0  ;;  %v867_v4 = vmax.f32 %v804_v23, 0.0  ;;  %v868_v14 = vmax.f32 %v805_v61, 0.0  ;;  %v869_v31 = vmax.f32 %v806_v5, 0.0 }
  0xc3   :  { %v810_v36 = vadd.f32 %v1954_v29, %v700_v58  ;;  %v870_v62 = vmax.f32 %v807_v38, 0.0  ;;  %v871_v0 = vmax.f32 %v808_v21, 0.0  ;;  %v872_v41 = vmax.f32 %v809_v25, 0.0 }
  0xc4   :  { %929 = vst [vmem:[#allocation8] sm:$0xff] %v866_v13  ;;  %930 = vst [vmem:[#allocation8 + $0x8] sm:$0xff] %v867_v4  ;;  %v812_v53 = vadd.f32 %v1926_v43, %v1825_v12  ;;  %v813_v46 = vadd.f32 %v1930_v28, %v1829_v11  ;;  %v814_v20 = vadd.f32 %v1934_v2, %v704_v40  ;;  %v1034_v61 = vpop.eup %1033  ;;  %v482_v11 = vld [vmem:[#allocation5 + $0x8] sm:$0x1] }
  0xc5   :  { %v873_v47 = vmax.f32 %v810_v36, 0.0  ;;  %931 = vst [vmem:[#allocation8 + $0x10] sm:$0xff] %v868_v14  ;;  %932 = vst [vmem:[#allocation8 + $0x18] sm:$0xff] %v869_v31  ;;  %v815_v35 = vadd.f32 %v1938_v32, %v705_v34  ;;  %v816_v13 = vadd.f32 %v1942_v49, %v1837_v27  ;;  %v817_v25 = vadd.f32 %v1946_v63, %v1842_v9 }
  0xc6   :  { %933 = vst [vmem:[#allocation8 + $0x20] sm:$0xff] %v870_v62  ;;  %934 = vst [vmem:[#allocation8 + $0x28] sm:$0xff] %v871_v0  ;;  %v818_v38 = vadd.f32 %v1950_v60, %v1846_v51  ;;  %v819_v15 = vadd.f32 %v1954_v29, %v1851_v3  ;;  %v547_v24 = vrot.slane %v1034_v61, %v1729_v52  ;;  %v875_v58 = vmax.f32 %v812_v53, 0.0 }
  0xc7   :  { %935 = vst [vmem:[#allocation8 + $0x30] sm:$0xff] %v872_v41  ;;  %936 = vst [vmem:[#allocation8 + $0x38] sm:$0xff] %v873_v47  ;;  %v876_v12 = vmax.f32 %v813_v46, 0.0  ;;  %v877_v62 = vmax.f32 %v814_v20, 0.0  ;;  %v878_v41 = vmax.f32 %v815_v35, 0.0  ;;  %v879_v40 = vmax.f32 %v816_v13, 0.0 }
  0xc8   :  { %v880_v34 = vmax.f32 %v817_v25, 0.0  ;;  %v881_v23 = vmax.f32 %v818_v38, 0.0  ;;  %v554_v27 = vrot.slane %v547_v24, %v1729_v52  ;;  %938 = vst [vmem:[#allocation8 + $0x48] sm:$0xff] %v875_v58  ;;  %v882_v9 = vmax.f32 %v819_v15, 0.0 }
  0xc9   :  { %939 = vst [vmem:[#allocation8 + $0x50] sm:$0xff] %v876_v12  ;;  %940 = vst [vmem:[#allocation8 + $0x58] sm:$0xff] %v877_v62  ;;  %v821_v51 = vadd.f32 %v1926_v43, %v1855_v45  ;;  %v822_v3 = vadd.f32 %v1930_v28, %v1859_v56  ;;  %v823_v5 = vadd.f32 %v1934_v2, %v1863_v8 }
  0xca   :  { %941 = vst [vmem:[#allocation8 + $0x60] sm:$0xff] %v878_v41  ;;  %942 = vst [vmem:[#allocation8 + $0x68] sm:$0xff] %v879_v40  ;;  %v824_v21 = vadd.f32 %v1938_v32, %v1867_v33  ;;  %v825_v36 = vadd.f32 %v1942_v49, %v1871_v6  ;;  %v826_v4 = vadd.f32 %v1946_v63, %v1875_v26  ;;  %v1035_v41 = vld [vmem:[#allocation2 + $0x130] sm:$0xff] }
  0xcb   :  { %943 = vst [vmem:[#allocation8 + $0x70] sm:$0xff] %v880_v34  ;;  %944 = vst [vmem:[#allocation8 + $0x78] sm:$0xff] %v881_v23  ;;  %v558_v45 = vmul.f32 %v554_v27, %v482_v11  ;;  %v884_v14 = vmax.f32 %v821_v51, 0.0  ;;  %v885_v56 = vmax.f32 %v822_v3, 0.0  ;;  %v827_v31 = vadd.f32 %v1950_v60, %v1879_v7  ;;  %v1036_v23 = vld [vmem:[#allocation2 + $0x138] sm:$0xff]  ;;  %v1037_v51 = vld [vmem:[#allocation2 + $0x140] sm:$0xff] }
  0xcc   :  { %945 = vst [vmem:[#allocation8 + $0x80] sm:$0xff] %v882_v9  ;;  %v886_v0 = vmax.f32 %v823_v5, 0.0  ;;  %v887_v47 = vmax.f32 %v824_v21, 0.0  ;;  %v888_v53 = vmax.f32 %v825_v36, 0.0  ;;  %v889_v8 = vmax.f32 %v826_v4, 0.0  ;;  %v2302_v27 = vld [vmem:[#allocation23_spill] sm:$0xff] }
  0xcd   :  { %v1995_v46 = vrot.slane %v558_v45, %v1743_v39  ;;  %947 = vst [vmem:[#allocation8 + $0x90] sm:$0xff] %v884_v14  ;;  %948 = vst [vmem:[#allocation8 + $0x98] sm:$0xff] %v885_v56  ;;  %v890_v33 = vmax.f32 %v827_v31, 0.0  ;;  %v828_v6 = vadd.f32 %v1954_v29, %v1883_v44  ;;  %v830_v26 = vadd.f32 %v1926_v43, %v1887_v1  ;;  %v2303_v3 = vld [vmem:[#allocation42_spill] sm:$0xff]  ;;  %v1038_v21 = vld [vmem:[#allocation2 + $0x148] sm:$0xff] }
  0xce   :  { %949 = vst [vmem:[#allocation8 + $0xa0] sm:$0xff] %v886_v0  ;;  %950 = vst [vmem:[#allocation8 + $0xa8] sm:$0xff] %v887_v47  ;;  %v831_v7 = vadd.f32 %v1930_v28, %v1891_v37  ;;  %v832_v20 = vadd.f32 %v1934_v2, %v1895_v55  ;;  %v833_v35 = vadd.f32 %v1938_v32, %v1899_v48  ;;  %v2304_v36 = vld [vmem:[#allocation24_spill] sm:$0xff]  ;;  %v1039_v45 = vld [vmem:[#allocation2 + $0x150] sm:$0xff] }
  0xcf   :  { %951 = vst [vmem:[#allocation8 + $0xb0] sm:$0xff] %v888_v53  ;;  %952 = vst [vmem:[#allocation8 + $0xb8] sm:$0xff] %v889_v8  ;;  %v834_v61 = vadd.f32 %v1942_v49, %v1903_v30  ;;  %v616_v44 = vmul.f32 %v1995_v46, %v1749_v22  ;;  %v701_v1 = vmul.f32 %v1995_v46, %v1681_v50  ;;  %v891_v37 = vmax.f32 %v828_v6, 0.0  ;;  %v560_v50 = vld [vmem:[#allocation7 + $0x8] sm:$0x1]  ;;  %v2305_v14 = vld [vmem:[#allocation46_spill] sm:$0xff] }
  0xd0   :  { %v710_v13 = vmul.f32 %v1995_v46, %v1683_v16  ;;  %953 = vst [vmem:[#allocation8 + $0xc0] sm:$0xff] %v890_v33  ;;  %v719_v55 = vmul.f32 %v1995_v46, %v1685_v42  ;;  %v893_v25 = vmax.f32 %v830_v26, 0.0  ;;  %v894_v38 = vmax.f32 %v831_v7, 0.0  ;;  %v1040_v31 = vld [vmem:[#allocation2 + $0x158] sm:$0xff]  ;;  %v2306_v0 = vld [vmem:[#allocation60_spill] sm:$0xff] }
  0xd1   :  { %v895_v48 = vmax.f32 %v832_v20, 0.0  ;;  %v681_v15 = vrot.slane %v616_v44, %v1729_v52  ;;  %954 = vst [vmem:[#allocation8 + $0xc8] sm:$0xff] %v891_v37  ;;  %v896_v30 = vmax.f32 %v833_v35, 0.0  ;;  %v897_v24 = vmax.f32 %v834_v61, 0.0  ;;  %v2307_v6 = vld [vmem:[#allocation18_spill] sm:$0xff] }
  0xd2   :  { %v835_v22 = vadd.f32 %v1946_v63, %v1907_v19  ;;  %956 = vst [vmem:[#allocation8 + $0xd8] sm:$0xff] %v893_v25  ;;  %957 = vst [vmem:[#allocation8 + $0xe0] sm:$0xff] %v894_v38  ;;  %v836_v16 = vadd.f32 %v1950_v60, %v1911_v57  ;;  %v837_v42 = vadd.f32 %v1954_v29, %v1915_v54 }
  0xd3   :  { %958 = vst [vmem:[#allocation8 + $0xe8] sm:$0xff] %v895_v48  ;;  %v728_v58 = vmul.f32 %v1995_v46, %v1689_v17  ;;  %v839_v12 = vadd.f32 %v1926_v43, %v1919_v18  ;;  %v688_v62 = vrot.slane %v681_v15, %v1729_v52  ;;  %959 = vst [vmem:[#allocation8 + $0xf0] sm:$0xff] %v896_v30 }
  0xd4   :  { %960 = vst [vmem:[#allocation8 + $0xf8] sm:$0xff] %v897_v24  ;;  %v898_v19 = vmax.f32 %v835_v22, 0.0  ;;  %v840_v11 = vadd.f32 %v1930_v28, %v1923_v59  ;;  %v731_v57 = vmul.f32 %v1035_v41, %v1765_v10  ;;  %v899_v40 = vmax.f32 %v836_v16, 0.0  ;;  %v1044_v41 = vld [vmem:[#allocation2 + $0x180] sm:$0xff] }
  0xd5   :  { %v900_v34 = vmax.f32 %v837_v42, 0.0  ;;  %v902_v54 = vmax.f32 %v839_v12, 0.0  ;;  %v732_v17 = vmul.f32 %v1036_v23, %v2302_v27  ;;  %v692_v9 = vsub.f32 %v560_v50, %v688_v62  ;;  %v2309_v12 = vld [vmem:[#allocation59_spill] sm:$0xff] }
  0xd6   :  { %961 = vst [vmem:[#allocation8 + $0x100] sm:$0xff] %v898_v19  ;;  %v903_v18 = vmax.f32 %v840_v11, 0.0  ;;  %v841_v52 = vadd.f32 %v1934_v2, %v731_v57  ;;  %v733_v5 = vmul.f32 %v1037_v51, %v2303_v3  ;;  %962 = vst [vmem:[#allocation8 + $0x108] sm:$0xff] %v899_v40  ;;  %v734_v4 = vmul.f32 %v1038_v21, %v2304_v36  ;;  %v1043_v19 = vld [vmem:[#allocation2 + $0x178] sm:$0xff]  ;;  %v1045_v40 = vld [vmem:[#allocation2 + $0x188] sm:$0xff] }
  0xd7   :  { %963 = vst [vmem:[#allocation8 + $0x110] sm:$0xff] %v900_v34  ;;  %965 = vst [vmem:[#allocation8 + $0x120] sm:$0xff] %v902_v54  ;;  %v842_v59 = vadd.f32 %v1938_v32, %v732_v17  ;;  %v735_v56 = vmul.f32 %v1039_v45, %v2305_v14  ;;  %v736_v47 = vmul.f32 %v1040_v31, %v2306_v0  ;;  %v1046_v54 = vld [vmem:[#allocation2 + $0x190] sm:$0xff]  ;;  %v1047_v17 = vld [vmem:[#allocation2 + $0x198] sm:$0xff] }
  0xd8   :  { %v2040_v53 = vrot.slane %v692_v9, %v1743_v39  ;;  %966 = vst [vmem:[#allocation8 + $0x128] sm:$0xff] %v903_v18  ;;  %v904_v8 = vmax.f32 %v841_v52, 0.0  ;;  %v843_v33 = vadd.f32 %v1942_v49, %v733_v5  ;;  %v737_v26 = vmul.f32 %v1995_v46, %v2307_v6 }
  0xd9   :  { %v905_v7 = vmax.f32 %v842_v59, 0.0  ;;  %v844_v20 = vadd.f32 %v1946_v63, %v734_v4  ;;  %v845_v35 = vadd.f32 %v1950_v60, %v735_v56  ;;  %v846_v61 = vadd.f32 %v1954_v29, %v736_v47 }
  0xda   :  { %v811_v44 = vadd.f32 %v2040_v53, %v701_v1  ;;  %v820_v37 = vadd.f32 %v2040_v53, %v710_v13  ;;  %v829_v39 = vadd.f32 %v2040_v53, %v719_v55  ;;  %v838_v25 = vadd.f32 %v2040_v53, %v728_v58  ;;  %967 = vst [vmem:[#allocation8 + $0x130] sm:$0xff] %v904_v8  ;;  %v1041_v13 = vld [vmem:[#allocation2 + $0x168] sm:$0xff]  ;;  %v2308_v55 = vld [vmem:[#allocation38_spill] sm:$0xff]  ;;  %v1048_v8 = vld [vmem:[#allocation2 + $0x1a0] sm:$0xff] }
  0xdb   :  { %968 = vst [vmem:[#allocation8 + $0x138] sm:$0xff] %v905_v7  ;;  %v906_v38 = vmax.f32 %v843_v33, 0.0  ;;  %v907_v48 = vmax.f32 %v844_v20, 0.0  ;;  %v908_v15 = vmax.f32 %v845_v35, 0.0  ;;  %v909_v30 = vmax.f32 %v846_v61, 0.0  ;;  %v1042_v58 = vld [vmem:[#allocation2 + $0x170] sm:$0xff] }
  0xdc   :  { %v874_v24 = vmax.f32 %v811_v44, 0.0  ;;  %v883_v22 = vmax.f32 %v820_v37, 0.0  ;;  %v892_v50 = vmax.f32 %v829_v39, 0.0  ;;  %v901_v16 = vmax.f32 %v838_v25, 0.0  ;;  %v2310_v61 = vld [vmem:[#allocation34_spill] sm:$0xff] }
  0xdd   :  { %969 = vst [vmem:[#allocation8 + $0x140] sm:$0xff] %v906_v38  ;;  %970 = vst [vmem:[#allocation8 + $0x148] sm:$0xff] %v907_v48  ;;  %v847_v1 = vadd.f32 %v2040_v53, %v737_v26  ;;  %v738_v42 = vmul.f32 %v1041_v13, %v2308_v55  ;;  %v739_v62 = vmul.f32 %v1042_v58, %v2309_v12  ;;  %v1049_v37 = vld [vmem:[#allocation2 + $0x1b0] sm:$0x1]  ;;  %v1050_v25 = vld [vmem:[#allocation2 + $0x1b8] sm:$0x1] }
  0xde   :  { %971 = vst [vmem:[#allocation8 + $0x150] sm:$0xff] %v908_v15  ;;  %972 = vst [vmem:[#allocation8 + $0x158] sm:$0xff] %v909_v30  ;;  %v740_v11 = vmul.f32 %v1043_v19, %v1765_v10  ;;  %v741_v57 = vmul.f32 %v1044_v41, %v2302_v27  ;;  %v742_v34 = vmul.f32 %v1045_v40, %v2303_v3  ;;  %v1051_v48 = vld [vmem:[#allocation2 + $0x1c0] sm:$0x1]  ;;  %v1052_v30 = vld [vmem:[#allocation2 + $0x1c8] sm:$0x1] }
  0xdf   :  { %937 = vst.msk [vmem:[#allocation8 + $0x40] sm:$0xff] %vm220_vm1, %v874_v24  ;;  %946 = vst.msk [vmem:[#allocation8 + $0x88] sm:$0xff] %vm220_vm1, %v883_v22  ;;  %v743_v23 = vmul.f32 %v1046_v54, %v2304_v36  ;;  %v744_v9 = vmul.f32 %v1047_v17, %v2305_v14  ;;  %v910_v18 = vmax.f32 %v847_v1, 0.0  ;;  %v848_v52 = vadd.f32 %v1926_v43, %v738_v42  ;;  %v1053_v22 = vld [vmem:[#allocation2 + $0x1d0] sm:$0x1] }
  0xe0   :  { %955 = vst.msk [vmem:[#allocation8 + $0xd0] sm:$0xff] %vm220_vm1, %v892_v50  ;;  %964 = vst.msk [vmem:[#allocation8 + $0x118] sm:$0xff] %vm220_vm1, %v901_v16  ;;  %v849_v51 = vadd.f32 %v1930_v28, %v739_v62  ;;  %v850_v5 = vadd.f32 %v1934_v2, %v740_v11  ;;  %v851_v59 = vadd.f32 %v1938_v32, %v741_v57  ;;  %v1054_v16 = vld [vmem:[#allocation2 + $0x1d8] sm:$0x1] }
  0xe1   :  { %v852_v21 = vadd.f32 %v1942_v49, %v742_v34  ;;  %v853_v4 = vadd.f32 %v1946_v63, %v743_v23  ;;  %v854_v45 = vadd.f32 %v1950_v60, %v744_v9  ;;  %973 = vst.msk [vmem:[#allocation8 + $0x160] sm:$0xff] %vm220_vm1, %v910_v18  ;;  %v911_v56 = vmax.f32 %v848_v52, 0.0 }
  0xe2   :  { %v912_v31 = vmax.f32 %v849_v51, 0.0  ;;  %v913_v47 = vmax.f32 %v850_v5, 0.0  ;;  %v745_v33 = vmul.f32 %v1048_v8, %v2306_v0  ;;  %v914_v6 = vmax.f32 %v851_v59, 0.0 }
  0xe3   :  { %v915_v26 = vmax.f32 %v852_v21, 0.0  ;;  %v916_v7 = vmax.f32 %v853_v4, 0.0  ;;  %v917_v20 = vmax.f32 %v854_v45, 0.0  ;;  %974 = vst [vmem:[#allocation8 + $0x168] sm:$0xff] %v911_v56  ;;  %v746_v44 = vmul.f32 %v1995_v46, %v2310_v61 }
  0xe4   :  { %975 = vst [vmem:[#allocation8 + $0x170] sm:$0xff] %v912_v31  ;;  %976 = vst [vmem:[#allocation8 + $0x178] sm:$0xff] %v913_v47  ;;  %v855_v35 = vadd.f32 %v1954_v29, %v745_v33  ;;  %v747_v39 = vmul.f32 %v1049_v37, %v2308_v55  ;;  %v748_v38 = vmul.f32 %v1050_v25, %v2309_v12 }
  0xe5   :  { %977 = vst [vmem:[#allocation8 + $0x180] sm:$0xff] %v914_v6  ;;  %978 = vst [vmem:[#allocation8 + $0x188] sm:$0xff] %v915_v26  ;;  %v749_v15 = vmul.f32 %v1051_v48, %v1765_v10  ;;  %v750_v24 = vmul.f32 %v1052_v30, %v2302_v27  ;;  %v751_v50 = vmul.f32 %v1053_v22, %v2303_v3 }
  0xe6   :  { %979 = vst [vmem:[#allocation8 + $0x190] sm:$0xff] %v916_v7  ;;  %980 = vst [vmem:[#allocation8 + $0x198] sm:$0xff] %v917_v20  ;;  %v752_v1 = vmul.f32 %v1054_v16, %v2304_v36  ;;  %v918_v13 = vmax.f32 %v855_v35, 0.0  ;;  %v856_v55 = vadd.f32 %v2040_v53, %v746_v44  ;;  %v857_v42 = vadd.f32 %v1926_v43, %v747_v39  ;;  %v1055_v36 = vld [vmem:[#allocation2 + $0x1e0] sm:$0x1] }
  0xe7   :  { %v858_v58 = vadd.f32 %v1930_v28, %v748_v38  ;;  %v859_v12 = vadd.f32 %v1934_v2, %v749_v15  ;;  %v860_v10 = vadd.f32 %v1938_v32, %v750_v24  ;;  %v861_v62 = vadd.f32 %v1942_v49, %v751_v50  ;;  %v1056_v2 = vld [vmem:[#allocation2 + $0x1e8] sm:$0x1]  ;;  %v2311_v32 = vld [vmem:[#allocation22_spill] sm:$0xff] }
  0xe8   :  { %v862_v27 = vadd.f32 %v1946_v63, %v752_v1  ;;  %981 = vst [vmem:[#allocation8 + $0x1a0] sm:$0xff] %v918_v13  ;;  %v919_v3 = vmax.f32 %v856_v55, 0.0  ;;  %v920_v19 = vmax.f32 %v857_v42, 0.0  ;;  %v753_v41 = vmul.f32 %v1055_v36, %v2305_v14 }
  0xe9   :  { %v921_v11 = vmax.f32 %v858_v58, 0.0  ;;  %v922_v57 = vmax.f32 %v859_v12, 0.0  ;;  %v923_v40 = vmax.f32 %v860_v10, 0.0  ;;  %v924_v43 = vmax.f32 %v861_v62, 0.0 }
  0xea   :  { %v925_v34 = vmax.f32 %v862_v27, 0.0  ;;  %982 = vst.msk [vmem:[#allocation8 + $0x1a8] sm:$0xff] %vm220_vm1, %v919_v3  ;;  %983 = vst [vmem:[#allocation8 + $0x1b0] sm:$0x1] %v920_v19  ;;  %v863_v28 = vadd.f32 %v1950_v60, %v753_v41  ;;  %v754_v63 = vmul.f32 %v1056_v2, %v2306_v0  ;;  %v755_v49 = vmul.f32 %v1995_v46, %v2311_v32 }
  0xeb   :  { %984 = vst [vmem:[#allocation8 + $0x1b8] sm:$0x1] %v921_v11  ;;  %985 = vst [vmem:[#allocation8 + $0x1c0] sm:$0x1] %v922_v57 }
  0xec   :  { %986 = vst [vmem:[#allocation8 + $0x1c8] sm:$0x1] %v923_v40  ;;  %987 = vst [vmem:[#allocation8 + $0x1d0] sm:$0x1] %v924_v43  ;;  %v926_v14 = vmax.f32 %v863_v28, 0.0  ;;  %v864_v54 = vadd.f32 %v1954_v29, %v754_v63  ;;  %v865_v23 = vadd.f32 %v2040_v53, %v755_v49 }
  0xed   :  { %988 = vst [vmem:[#allocation8 + $0x1d8] sm:$0x1] %v925_v34 }
  0xee   :  { %989 = vst [vmem:[#allocation8 + $0x1e0] sm:$0x1] %v926_v14  ;;  %v927_v17 = vmax.f32 %v864_v54, 0.0  ;;  %v928_v60 = vmax.f32 %v865_v23, 0.0 }
  0xf0   :  { %990 = vst [vmem:[#allocation8 + $0x1e8] sm:$0x1] %v927_v17  ;;  %991 = vst.msk [vmem:[#allocation8 + $0x1f0] sm:$0x1] %vm232_vm2, %v928_v60 }
  0xf1   :  { %1134 = shalt.err (!%p1131_p0)
}
  0xf2   :  { %s1135_s27 = scalar_lea.hbm %s2116_s3, 8064 }
  0xf3   :  { %p1136_p1 = scmp.ne.s32.totalorder %s2116_s3, %s1135_s27  ;;  %p1139_p2 = scmp.lt.u32.totalorder %s1135_s27, %s2116_s3 }
  0xf5   :  { %p1141_p3 = pnand %p1139_p2, %p1136_p1 }
  0xf7   :  { %1144 = shalt.err (!%p1141_p3)
}
  0xf8   :  { %1003 = dma.vmem_to_hbm [thread:$0]  %s998_s23, 8064, %s2116_s3, [#allocation4], %s1153_s1, %s1153_s1, %s1154_s8  }
  0xf9   :  { %1149 = dma.done.wait [#allocation4], 8064  }
  0xfa   :  { %1150 = vsyncadd [#allocation4], 4294959232 }
  0xfb   :  { %1007 = vsyncpa [#allocation3], 1 }
  0xfc   :  { %1008 = vsyncpa [#allocation6], 1 }
  0xfd   :  { %1009 = vsyncpa [#allocation4], 1 }

</bundles_post_ra>
